<compile_context>
chip_gen: v6e
topology: v6e:2x2x1
jax: 0.10.0
libtpu: 0.0.40
codegen_flags: <defaults>
</compile_context>

<pallas_src>
import jax
import jax.numpy as jnp
from jax.experimental import pallas as pl
from jax.experimental.pallas import tpu as pltpu


def _gelu_exact(x):
    # PyTorch nn.GELU() default = exact erf-based GELU.
    inv_sqrt2 = jnp.asarray(0.7071067811865476, dtype=x.dtype)
    return 0.5 * x * (1.0 + jax.lax.erf(x * inv_sqrt2))


def _round_up(x, m):
    return ((x + m - 1) // m) * m


def interaction_mlp_kernel(r2d_ref, r3d_ref, w1t_ref, w1b_ref, b1_ref,
                           w2_ref, b2_ref, o_ref):
    # Layer 1: split-weight matmul replaces cat([r2d, r3d]) @ W1.
    #   cat(x2, x3) @ W1 == x2 @ W1[:E] + x3 @ W1[E:]
    h = (jnp.dot(r2d_ref[...], w1t_ref[...], preferred_element_type=jnp.float32)
         + jnp.dot(r3d_ref[...], w1b_ref[...], preferred_element_type=jnp.float32)
         + b1_ref[...])
    # Dropout(p=0) == identity, Identity norm, GELU.
    h = _gelu_exact(h)

    # Layer 2.
    h = (jnp.dot(h.astype(w2_ref.dtype), w2_ref[...],
                 preferred_element_type=jnp.float32)
         + b2_ref[...])
    h = _gelu_exact(h)

    o_ref[...] = h.astype(o_ref.dtype)


def interaction_mlp(rep_2d, rep_3d, w1, b1, w2, b2, *, block_rows=1024):
    """InteractionMLP forward.

    rep_2d, rep_3d: (N, E) float32.
    w1, w2:         (2E, 2E) float32, stored (in, out)  (i.e. W_torch.T).
    b1, b2:         (1, 2E) float32.
    Returns (N, 2E).
    """
    N, E = rep_2d.shape
    D = 2 * E
    D_pad = _round_up(D, 128)          # lane-dense hidden / output dim
    pad_c = D_pad - D

    # --- prepare weights: split W1 (removes in-kernel concat), zero-pad lanes.
    # Padded W1/b1 columns are zero -> padded hidden lanes are GELU(0)=0.
    # Padded W2 ROWS are zero -> padded hidden lanes contribute nothing;
    # padded W2 columns/b2 are zero -> padded output lanes are inert (sliced off).
    w1_top = jnp.pad(w1[:E, :], ((0, 0), (0, pad_c)))      # (E, D_pad)
    w1_bot = jnp.pad(w1[E:, :], ((0, 0), (0, pad_c)))      # (E, D_pad)
    b1_p   = jnp.pad(b1,        ((0, 0), (0, pad_c)))      # (1, D_pad)
    w2_p   = jnp.pad(w2,        ((0, pad_c), (0, pad_c)))  # (D_pad, D_pad)
    b2_p   = jnp.pad(b2,        ((0, 0), (0, pad_c)))      # (1, D_pad)
    # (Optional v6e/v7x speedup, relaxes numerics: cast w1_top/w1_bot/w2_p to
    #  bf16 here; accumulation stays f32 via preferred_element_type.)

    # --- row tiling: large tiles for pipelining, padded to a TN multiple.
    TN = min(block_rows, _round_up(N, 8))
    N_pad = _round_up(N, TN)
    if N_pad != N:
        rep_2d = jnp.pad(rep_2d, ((0, N_pad - N), (0, 0)))
        rep_3d = jnp.pad(rep_3d, ((0, N_pad - N), (0, 0)))
    grid = (N_pad // TN,)

    row_spec = lambda d: pl.BlockSpec((TN, d), lambda i: (i, 0))
    pin_spec = lambda s: pl.BlockSpec(s, lambda i: (0, 0))   # VMEM-resident params

    out = pl.pallas_call(
        interaction_mlp_kernel,
        out_shape=jax.ShapeDtypeStruct((N_pad, D_pad), rep_2d.dtype),
        grid=grid,
        in_specs=[
            row_spec(E),              # rep_2d tile
            row_spec(E),              # rep_3d tile
            pin_spec((E, D_pad)),     # W1 top half
            pin_spec((E, D_pad)),     # W1 bottom half
            pin_spec((1, D_pad)),     # b1
            pin_spec((D_pad, D_pad)), # W2
            pin_spec((1, D_pad)),     # b2
        ],
        out_specs=row_spec(D_pad),
        compiler_params=pltpu.CompilerParams(
            dimension_semantics=("parallel",),
            vmem_limit_bytes=32 * 1024 * 1024,
        ),
    )(rep_2d, rep_3d, w1_top, w1_bot, b1_p, w2_p, b2_p)

    # Slice away row padding and lane padding.
    return out[:N, :D]


def glorot_uniform(key, shape):
    fan_in, fan_out = shape
    limit = (6.0 / (fan_in + fan_out)) ** 0.5
    return jax.random.uniform(key, shape, jnp.float32, -limit, limit)


if __name__ == "__main__":
    emb_dim = 32          # -> hidden dim D = 64 after 'cat'
    N = 8                 # number of (graph/molecule) rows
    D = 2 * emb_dim

    key = jax.random.PRNGKey(0)
    k_r2d, k_r3d, k_w1, k_w2 = jax.random.split(key, 4)

    rep_2d = jax.random.normal(k_r2d, (N, emb_dim), jnp.float32)
    rep_3d = jax.random.normal(k_r3d, (N, emb_dim), jnp.float32)

    # Deterministic parameter init: glorot-uniform weights, zero biases
    # (as in reset_parameters with initializer='glorot').
    # Stored pre-transposed (in, out) so the kernel computes x @ W (== x @ W_pt.T).
    w1 = glorot_uniform(k_w1, (D, D))
    b1 = jnp.zeros((1, D), jnp.float32)
    w2 = glorot_uniform(k_w2, (D, D))
    b2 = jnp.zeros((1, D), jnp.float32)

    out = interaction_mlp(rep_2d, rep_3d, w1, b1, w2, b2)
    out = jax.block_until_ready(out)

    # Pure-JAX reference for sanity (exact, unpadded path).
    x = jnp.concatenate([rep_2d, rep_3d], axis=-1)
    h = _gelu_exact(x @ w1 + b1)
    ref = _gelu_exact(h @ w2 + b2)
    assert out.shape == (N, D)
    assert jnp.allclose(out, ref, atol=1e-5, rtol=1e-5)

    print("KERNEL_OK")
</pallas_src>

<mosaic_0001>
module attributes {stable_mosaic.version = 11 : i64} {
  func.func @interaction_mlp_kernel(%arg0: i32, %arg1: memref<8x32xf32, #tpu.memory_space<vmem>>, %arg2: memref<8x32xf32, #tpu.memory_space<vmem>>, %arg3: memref<32x128xf32, #tpu.memory_space<vmem>>, %arg4: memref<32x128xf32, #tpu.memory_space<vmem>>, %arg5: memref<1x128xf32, #tpu.memory_space<vmem>>, %arg6: memref<128x128xf32, #tpu.memory_space<vmem>>, %arg7: memref<1x128xf32, #tpu.memory_space<vmem>>, %arg8: memref<8x128xf32, #tpu.memory_space<vmem>>) attributes {dimension_semantics = [#tpu.dimension_semantics<parallel>], iteration_bounds = array<i64: 1>, scalar_prefetch = 0 : i64, scratch_operands = 0 : i64, tpu.core_type = #tpu.core_type<tc>, window_params = [{transform_indices = @transform_0, window_bounds = array<i64: 8, 32>}, {transform_indices = @transform_1, window_bounds = array<i64: 8, 32>}, {pipeline_mode = #tpu.pipeline_mode<synchronous>, transform_indices = @transform_2, window_bounds = array<i64: 32, 128>}, {pipeline_mode = #tpu.pipeline_mode<synchronous>, transform_indices = @transform_3, window_bounds = array<i64: 32, 128>}, {pipeline_mode = #tpu.pipeline_mode<synchronous>, transform_indices = @transform_4, window_bounds = array<i64: 1, 128>}, {pipeline_mode = #tpu.pipeline_mode<synchronous>, transform_indices = @transform_5, window_bounds = array<i64: 128, 128>}, {pipeline_mode = #tpu.pipeline_mode<synchronous>, transform_indices = @transform_6, window_bounds = array<i64: 1, 128>}, {transform_indices = @transform_7, window_bounds = array<i64: 8, 128>}]} {
    %c0 = arith.constant 0 : index
    %c0_0 = arith.constant 0 : index
    %0 = vector.load %arg1[%c0, %c0_0] : memref<8x32xf32, #tpu.memory_space<vmem>>, vector<8x32xf32>
    %c0_1 = arith.constant 0 : index
    %c0_2 = arith.constant 0 : index
    %1 = vector.load %arg3[%c0_1, %c0_2] : memref<32x128xf32, #tpu.memory_space<vmem>>, vector<32x128xf32>
    %cst = arith.constant dense<0.000000e+00> : vector<8x128xf32>
    %2 = tpu.matmul %0, %1, %cst {dimension_numbers = #tpu.dot_dimension_numbers<[1], [0], [0], [1], [0, 0, 1, 1], [], []>} : vector<8x32xf32>, vector<32x128xf32>, vector<8x128xf32> -> vector<8x128xf32>
    %c0_3 = arith.constant 0 : index
    %c0_4 = arith.constant 0 : index
    %3 = vector.load %arg2[%c0_3, %c0_4] : memref<8x32xf32, #tpu.memory_space<vmem>>, vector<8x32xf32>
    %c0_5 = arith.constant 0 : index
    %c0_6 = arith.constant 0 : index
    %4 = vector.load %arg4[%c0_5, %c0_6] : memref<32x128xf32, #tpu.memory_space<vmem>>, vector<32x128xf32>
    %cst_7 = arith.constant dense<0.000000e+00> : vector<8x128xf32>
    %5 = tpu.matmul %3, %4, %cst_7 {dimension_numbers = #tpu.dot_dimension_numbers<[1], [0], [0], [1], [0, 0, 1, 1], [], []>} : vector<8x32xf32>, vector<32x128xf32>, vector<8x128xf32> -> vector<8x128xf32>
    %6 = arith.addf %2, %5 : vector<8x128xf32>
    %c0_8 = arith.constant 0 : index
    %c0_9 = arith.constant 0 : index
    %7 = vector.load %arg5[%c0_8, %c0_9] : memref<1x128xf32, #tpu.memory_space<vmem>>, vector<1x128xf32>
    %8 = vector.broadcast %7 : vector<1x128xf32> to vector<8x128xf32>
    %9 = arith.addf %6, %8 : vector<8x128xf32>
    %cst_10 = arith.constant 5.000000e-01 : f32
    %10 = vector.broadcast %cst_10 : f32 to vector<8x128xf32>
    %11 = arith.mulf %10, %9 : vector<8x128xf32>
    %cst_11 = arith.constant 0.707106769 : f32
    %12 = vector.broadcast %cst_11 : f32 to vector<8x128xf32>
    %13 = arith.mulf %9, %12 : vector<8x128xf32>
    %14 = math.erf %13 : vector<8x128xf32>
    %cst_12 = arith.constant 1.000000e+00 : f32
    %15 = vector.broadcast %cst_12 : f32 to vector<8x128xf32>
    %16 = arith.addf %15, %14 : vector<8x128xf32>
    %17 = arith.mulf %11, %16 : vector<8x128xf32>
    %c0_13 = arith.constant 0 : index
    %c0_14 = arith.constant 0 : index
    %18 = vector.load %arg6[%c0_13, %c0_14] : memref<128x128xf32, #tpu.memory_space<vmem>>, vector<128x128xf32>
    %cst_15 = arith.constant dense<0.000000e+00> : vector<8x128xf32>
    %19 = tpu.matmul %17, %18, %cst_15 {dimension_numbers = #tpu.dot_dimension_numbers<[1], [0], [0], [1], [0, 0, 1, 1], [], []>} : vector<8x128xf32>, vector<128x128xf32>, vector<8x128xf32> -> vector<8x128xf32>
    %c0_16 = arith.constant 0 : index
    %c0_17 = arith.constant 0 : index
    %20 = vector.load %arg7[%c0_16, %c0_17] : memref<1x128xf32, #tpu.memory_space<vmem>>, vector<1x128xf32>
    %21 = vector.broadcast %20 : vector<1x128xf32> to vector<8x128xf32>
    %22 = arith.addf %19, %21 : vector<8x128xf32>
    %cst_18 = arith.constant 5.000000e-01 : f32
    %23 = vector.broadcast %cst_18 : f32 to vector<8x128xf32>
    %24 = arith.mulf %23, %22 : vector<8x128xf32>
    %cst_19 = arith.constant 0.707106769 : f32
    %25 = vector.broadcast %cst_19 : f32 to vector<8x128xf32>
    %26 = arith.mulf %22, %25 : vector<8x128xf32>
    %27 = math.erf %26 : vector<8x128xf32>
    %cst_20 = arith.constant 1.000000e+00 : f32
    %28 = vector.broadcast %cst_20 : f32 to vector<8x128xf32>
    %29 = arith.addf %28, %27 : vector<8x128xf32>
    %30 = arith.mulf %24, %29 : vector<8x128xf32>
    %c0_21 = arith.constant 0 : index
    %c0_22 = arith.constant 0 : index
    %31 = vector.load %arg8[%c0_21, %c0_22] : memref<8x128xf32, #tpu.memory_space<vmem>>, vector<8x128xf32>
    tpu.vector_store %arg8[%c0_21, %c0_22], %30 {strides = array<i32>} : memref<8x128xf32, #tpu.memory_space<vmem>>, vector<8x128xf32>,
    return
  }
  func.func @transform_0(%arg0: i32) -> (i32, i32) {
    %c0_i32 = arith.constant 0 : i32
    %c0_i32_0 = arith.constant 0 : i32
    return %arg0, %c0_i32 : i32, i32
  }
  func.func @transform_1(%arg0: i32) -> (i32, i32) {
    %c0_i32 = arith.constant 0 : i32
    %c0_i32_0 = arith.constant 0 : i32
    return %arg0, %c0_i32 : i32, i32
  }
  func.func @transform_2(%arg0: i32) -> (i32, i32) {
    %c0_i32 = arith.constant 0 : i32
    %c0_i32_0 = arith.constant 0 : i32
    %c0_i32_1 = arith.constant 0 : i32
    return %c0_i32, %c0_i32_0 : i32, i32
  }
  func.func @transform_3(%arg0: i32) -> (i32, i32) {
    %c0_i32 = arith.constant 0 : i32
    %c0_i32_0 = arith.constant 0 : i32
    %c0_i32_1 = arith.constant 0 : i32
    return %c0_i32, %c0_i32_0 : i32, i32
  }
  func.func @transform_4(%arg0: i32) -> (i32, i32) {
    %c0_i32 = arith.constant 0 : i32
    %c0_i32_0 = arith.constant 0 : i32
    %c0_i32_1 = arith.constant 0 : i32
    return %c0_i32, %c0_i32_0 : i32, i32
  }
  func.func @transform_5(%arg0: i32) -> (i32, i32) {
    %c0_i32 = arith.constant 0 : i32
    %c0_i32_0 = arith.constant 0 : i32
    %c0_i32_1 = arith.constant 0 : i32
    return %c0_i32, %c0_i32_0 : i32, i32
  }
  func.func @transform_6(%arg0: i32) -> (i32, i32) {
    %c0_i32 = arith.constant 0 : i32
    %c0_i32_0 = arith.constant 0 : i32
    %c0_i32_1 = arith.constant 0 : i32
    return %c0_i32, %c0_i32_0 : i32, i32
  }
  func.func @transform_7(%arg0: i32) -> (i32, i32) {
    %c0_i32 = arith.constant 0 : i32
    %c0_i32_0 = arith.constant 0 : i32
    return %arg0, %c0_i32 : i32, i32
  }
}

</mosaic_0001>

<bundles_post_ra>
// kernel: tpu_custom_call.1
= control target key start
LH: loop header
LB: loop body
LE: loop exit
PB: predicated region body
PF: predicated region fallthrough
CT: control target
= control target key end

     0   :  { %12 = vsyncpa [#allocation3], 0  ;;  %s722_s0 = inlined_call_operand.hbm [shape: f32[8,32], index: 0, kind: input, shape index: {}]   ;;  %s723_s1 = inlined_call_operand.hbm [shape: f32[8,32], index: 1, kind: input, shape index: {}]   ;;  %s724_s2 = inlined_call_operand.hbm [shape: f32[32,128], index: 2, kind: input, shape index: {}]   ;;  %s725_s3 = inlined_call_operand.hbm [shape: f32[32,128], index: 3, kind: input, shape index: {}]   ;;  %s726_s4 = inlined_call_operand.vmem [shape: f32[1,128], index: 4, kind: input, shape index: {}]   ;;  %s727_s5 = inlined_call_operand.hbm [shape: f32[128,128], index: 5, kind: input, shape index: {}]   ;;  %s728_s6 = inlined_call_operand.vmem [shape: f32[1,128], index: 6, kind: input, shape index: {}]   ;;  %s729_s7 = inlined_call_operand.hbm [shape: f32[8,128], index: 7, kind: output, shape index: {}]  }
   0x1   :  { %13 = vsyncpa [#allocation6], 0 }
   0x2   :  { %14 = vsyncpa [#allocation9], 0 }
   0x3   :  { %15 = vsyncpa [#allocation4], 0  ;;  %s607_s24 = smov [#allocation5]  }
   0x4   :  { %s32_s25 = sshll.u32 %s607_s24, 4  ;;  %s33_s25 = int_to_ptr.vmem [resolvable:$true] %s32_s25 }
   0x5   :  { %s487_s26 = scalar_lea.vmem %s33_s25, 128  ;;  %p492_p1 = scmp.lt.s32.totalorder %s33_s25, %s33_s25 }
   0x6   :  { %p488_p0 = scmp.ne.s32.totalorder %s33_s25, %s487_s26  ;;  %p493_p2 = scmp.lt.s32.totalorder %s487_s26, %s487_s26 }
   0x8   :  { %p494_p3 = por %p493_p2, %p492_p1 }
   0xa   :  { %p495_p4 = pnand %p494_p3, %p488_p0 }
   0xc   :  { %498 = shalt.err (!%p495_p4)
}
   0xd   :  { %35 = dma.hbm_to_vmem [thread:$0]  %s723_s1, 128, %s33_s25, [#allocation6]  }
   0xe   :  { %s608_s29 = smov [#allocation8]   ;;  %s609_s8 = smov [#allocation2]  }
   0xf   :  { %s53_s30 = sshll.u32 %s608_s29, 4  ;;  %s22_s9 = sshll.u32 %s609_s8, 4  ;;  %s54_s30 = int_to_ptr.vmem [resolvable:$true] %s53_s30  ;;  %s23_s9 = int_to_ptr.vmem [resolvable:$true] %s22_s9 }
  0x10   :  { %s507_s10 = scalar_lea.vmem %s54_s30, 512  ;;  %p512_p6 = scmp.lt.s32.totalorder %s54_s30, %s54_s30 }
  0x11   :  { %p508_p5 = scmp.ne.s32.totalorder %s54_s30, %s507_s10  ;;  %p513_p7 = scmp.lt.s32.totalorder %s507_s10, %s507_s10 }
  0x13   :  { %p514_p8 = por %p513_p7, %p512_p6 }
  0x15   :  { %p515_p9 = pnand %p514_p8, %p508_p5 }
  0x17   :  { %518 = shalt.err (!%p515_p9)
}
  0x18   :  { %s610_s11 = smov 128   ;;  %s611_s12 = smov 8  }
  0x19   :  { %59 = dma.hbm_to_vmem [thread:$0]  %s725_s3, 512, %s54_s30, [#allocation9], %s610_s11, %s610_s11, %s611_s12  }
  0x1a   :  { %s527_s1 = scalar_lea.vmem %s23_s9, 128  ;;  %p532_p11 = scmp.lt.s32.totalorder %s23_s9, %s23_s9 }
  0x1b   :  { %p528_p10 = scmp.ne.s32.totalorder %s23_s9, %s527_s1  ;;  %p533_p12 = scmp.lt.s32.totalorder %s527_s1, %s527_s1 }
  0x1d   :  { %p534_p13 = por %p533_p12, %p532_p11 }
  0x1f   :  { %p535_p0 = pnand %p534_p13, %p528_p10 }
  0x21   :  { %538 = shalt.err (!%p535_p0)
}
  0x22   :  { %25 = dma.hbm_to_vmem [thread:$0]  %s722_s0, 128, %s23_s9, [#allocation3]  }
  0x23   :  { %s612_s17 = smov [#allocation7]   ;;  %s613_s19 = smov [#allocation10]  }
  0x24   :  { %s41_s18 = sshll.u32 %s612_s17, 4  ;;  %s67_s20 = sshll.u32 %s613_s19, 4  ;;  %s42_s18 = int_to_ptr.vmem [resolvable:$true] %s41_s18  ;;  %s68_s20 = int_to_ptr.vmem [resolvable:$true] %s67_s20 }
  0x25   :  { %s547_s21 = scalar_lea.vmem %s42_s18, 512  ;;  %p552_p2 = scmp.lt.s32.totalorder %s42_s18, %s42_s18 }
  0x26   :  { %p548_p1 = scmp.ne.s32.totalorder %s42_s18, %s547_s21  ;;  %p553_p3 = scmp.lt.s32.totalorder %s547_s21, %s547_s21 }
  0x28   :  { %p554_p4 = por %p553_p3, %p552_p2 }
  0x2a   :  { %p555_p5 = pnand %p554_p4, %p548_p1 }
  0x2c   :  { %558 = shalt.err (!%p555_p5)
}
  0x2d   :  { %47 = dma.hbm_to_vmem [thread:$0]  %s724_s2, 512, %s42_s18, [#allocation6], %s610_s11, %s610_s11, %s611_s12  }
  0x2e   :  { %s567_s0 = scalar_lea.vmem %s68_s20, 2048  ;;  %p572_p7 = scmp.lt.s32.totalorder %s68_s20, %s68_s20 }
  0x2f   :  { %p568_p6 = scmp.ne.s32.totalorder %s68_s20, %s567_s0  ;;  %p573_p8 = scmp.lt.s32.totalorder %s567_s0, %s567_s0 }
  0x31   :  { %p574_p9 = por %p573_p8, %p572_p7 }
  0x33   :  { %p575_p10 = pnand %p574_p9, %p568_p6 }
  0x35   :  { %578 = shalt.err (!%p575_p10)
}
  0x36   :  { %73 = dma.hbm_to_vmem [thread:$0]  %s727_s5, 2048, %s68_s20, [#allocation9], %s610_s11, %s610_s11, %s611_s12  }
  0x37   :  { %599 = dma.done.wait [#allocation3], 128  }
  0x38   :  { %600 = vsyncadd [#allocation3], 4294967168 }
  0x39   :  { %601 = dma.done.wait [#allocation6], 640  }
  0x3a   :  { %602 = vsyncadd [#allocation6], 4294966656 }
  0x3b   :  { %603 = dma.done.wait [#allocation9], 2560  }
  0x3c   :  { %604 = vsyncadd [#allocation9], 4294964736  ;;  %v614_v0 = vmov 0.0   ;;  %vm615_vm0 = vmmov 0   ;;  %v100_v1 = vld [vmem:[#allocation8 + $0x18] sm:$0xff]  ;;  %v99_v2 = vld [vmem:[#allocation8 + $0x10] sm:$0xff] }
  0x3d   :  { %408 = vmatprep.subr.mxu1 %v614_v0  ;;  %416 = vmatprep.mubr.msk.f32.mxu1 %vm615_vm0, %v614_v0  ;;  %v98_v3 = vld [vmem:[#allocation8 + $0x8] sm:$0xff]  ;;  %v97_v4 = vld [vmem:[#allocation8] sm:$0xff]  ;;  %v96_v5 = vld [vmem:[#allocation5] sm:$0xff]  ;;  %vm101_vm1 = vcmask 261120  }
  0x3e   :  { %430 = vmatprep.subr.mxu0 %v614_v0  ;;  %462 = vmatprep.mubr.msk.f32.mxu0 %vm615_vm0, %v614_v0  ;;  %v95_v6 = vld [vmem:[#allocation7 + $0x18] sm:$0xff]  ;;  %v94_v7 = vld [vmem:[#allocation7 + $0x10] sm:$0xff]  ;;  %v93_v8 = vld [vmem:[#allocation7 + $0x8] sm:$0xff] }
  0x3f   :  { %409 = vmatpush3.msra.mxu1 %v100_v1  ;;  %v92_v9 = vld [vmem:[#allocation7] sm:$0xff]  ;;  %v91_v10 = vld [vmem:[#allocation2] sm:$0xff]  ;;  %v276_v11 = vld [vmem:[#allocation10 + $0x78] sm:$0xff] }
  0x40   :  { %410 = vmatprep.subr.mxu1 %v614_v0  ;;  %431 = vmatpush3.msra.mxu0 %v276_v11  ;;  %v275_v12 = vld [vmem:[#allocation10 + $0x70] sm:$0xff]  ;;  %v274_v13 = vld [vmem:[#allocation10 + $0x68] sm:$0xff]  ;;  %v273_v14 = vld [vmem:[#allocation10 + $0x60] sm:$0xff] }
  0x41   :  { %411 = vmatpush3.msra.mxu1 %v99_v2  ;;  %432 = vmatprep.subr.mxu0 %v614_v0  ;;  %v272_v15 = vld [vmem:[#allocation10 + $0x58] sm:$0xff]  ;;  %v271_v16 = vld [vmem:[#allocation10 + $0x50] sm:$0xff]  ;;  %v270_v17 = vld [vmem:[#allocation10 + $0x48] sm:$0xff] }
  0x42   :  { %412 = vmatprep.subr.mxu1 %v614_v0  ;;  %433 = vmatpush3.msra.mxu0 %v275_v12  ;;  %v269_v18 = vld [vmem:[#allocation10 + $0x40] sm:$0xff]  ;;  %v268_v19 = vld [vmem:[#allocation10 + $0x38] sm:$0xff]  ;;  %v267_v20 = vld [vmem:[#allocation10 + $0x30] sm:$0xff] }
  0x43   :  { %413 = vmatpush3.msra.mxu1 %v98_v3  ;;  %434 = vmatprep.subr.mxu0 %v614_v0  ;;  %v266_v21 = vld [vmem:[#allocation10 + $0x28] sm:$0xff]  ;;  %v265_v22 = vld [vmem:[#allocation10 + $0x20] sm:$0xff]  ;;  %v264_v23 = vld [vmem:[#allocation10 + $0x18] sm:$0xff] }
  0x44   :  { %414 = vmatprep.subr.mxu1 %v614_v0  ;;  %435 = vmatpush3.msra.mxu0 %v274_v13  ;;  %v263_v24 = vld [vmem:[#allocation10 + $0x10] sm:$0xff]  ;;  %v262_v25 = vld [vmem:[#allocation10 + $0x8] sm:$0xff]  ;;  %v261_v26 = vld [vmem:[#allocation10] sm:$0xff] }
  0x45   :  { %415 = vmatpush3.msra.mxu1 %v97_v4  ;;  %436 = vmatprep.subr.mxu0 %v614_v0  ;;  %v379_v30 = vld [vmem:[%s726_s4] ss:$0 sm:$0xff]  ;;  %s616_s4 = smov [#allocation11]  }
  0x46   :  { %417 = vmatmul.mubr.msk.f32.vlgmr.msra.gmra.mxu1 %vm101_vm1, %v96_v5  ;;  %419 = vmatprep.subr.mxu1 %v614_v0  ;;  %v380_v39 = vld [vmem:[%s728_s6] ss:$0 sm:$0xff]  ;;  %s366_s27 = sshll.u32 %s616_s4, 4  ;;  %s367_s27 = int_to_ptr.vmem [resolvable:$true] %s366_s27 }
  0x47   :  { %420 = vmatpush3.msra.mxu1 %v95_v6  ;;  %427 = vmatprep.mubr.msk.f32.mxu1 %vm615_vm0, %v614_v0  ;;  %s579_s28 = scalar_lea.vmem %s367_s27, 128  ;;  %p584_p12 = scmp.lt.s32.totalorder %s367_s27, %s367_s27 }
  0x48   :  { %421 = vmatprep.subr.mxu1 %v614_v0  ;;  %437 = vmatpush3.msra.mxu0 %v273_v14  ;;  %p580_p11 = scmp.ne.s32.totalorder %s367_s27, %s579_s28  ;;  %p585_p13 = scmp.lt.s32.totalorder %s579_s28, %s579_s28 }
  0x49   :  { %422 = vmatpush3.msra.mxu1 %v94_v7  ;;  %438 = vmatprep.subr.mxu0 %v614_v0 }
  0x4a   :  { %423 = vmatprep.subr.mxu1 %v614_v0  ;;  %439 = vmatpush3.msra.mxu0 %v272_v15  ;;  %p586_p0 = por %p585_p13, %p584_p12 }
  0x4b   :  { %424 = vmatpush3.msra.mxu1 %v93_v8  ;;  %440 = vmatprep.subr.mxu0 %v614_v0 }
  0x4c   :  { %425 = vmatprep.subr.mxu1 %v614_v0  ;;  %441 = vmatpush3.msra.mxu0 %v271_v16  ;;  %p587_p1 = pnand %p586_p0, %p580_p11 }
  0x4d   :  { %426 = vmatpush3.msra.mxu1 %v92_v9  ;;  %442 = vmatprep.subr.mxu0 %v614_v0 }
  0x4e   :  { %428 = vmatmul.mubr.msk.f32.vlgmr.msra.gmra.mxu1 %vm101_vm1, %v91_v10  ;;  %443 = vmatpush3.msra.mxu0 %v270_v17 }
  0x4f   :  { %444 = vmatprep.subr.mxu0 %v614_v0 }
  0x50   :  { %445 = vmatpush3.msra.mxu0 %v269_v18 }
  0x51   :  { %446 = vmatprep.subr.mxu0 %v614_v0 }
  0x52   :  { %447 = vmatpush3.msra.mxu0 %v268_v19 }
  0x53   :  { %448 = vmatprep.subr.mxu0 %v614_v0 }
  0x54   :  { %449 = vmatpush3.msra.mxu0 %v267_v20 }
  0x55   :  { %450 = vmatprep.subr.mxu0 %v614_v0 }
  0x56   :  { %451 = vmatpush3.msra.mxu0 %v266_v21 }
  0x57   :  { %452 = vmatprep.subr.mxu0 %v614_v0 }
  0x58   :  { %453 = vmatpush3.msra.mxu0 %v265_v22 }
  0x59   :  { %454 = vmatprep.subr.mxu0 %v614_v0 }
  0x5a   :  { %455 = vmatpush3.msra.mxu0 %v264_v23 }
  0x5b   :  { %456 = vmatprep.subr.mxu0 %v614_v0 }
  0x5c   :  { %457 = vmatpush3.msra.mxu0 %v263_v24 }
  0x5d   :  { %458 = vmatprep.subr.mxu0 %v614_v0 }
  0x5e   :  { %459 = vmatpush3.msra.mxu0 %v262_v25 }
  0x5f   :  { %460 = vmatprep.subr.mxu0 %v614_v0 }
  0x60   :  { %461 = vmatpush3.msra.mxu0 %v261_v26 }
 0x106   :  { %v171_v27 = vpop.f32.mrf.mxu1 }
 0x108   :  { %v418_v28 = vpop.f32.mrf.mxu1 }
 0x10e   :  { %v244_v29 = vpop.f32.mrf.mxu1 }
 0x10f   :  { %v245_v31 = vadd.f32 %v244_v29, %v171_v27 }
 0x110   :  { %v429_v32 = vpop.f32.mrf.mxu1 }
 0x111   :  { %v255_v33 = vadd.f32 %v379_v30, %v245_v31 }
 0x113   :  { %v257_v34 = vmul.f32 0.70710677, %v255_v33  ;;  %v256_v36 = vmul.f32 0.5, %v255_v33 }
 0x115   :  { %475 = verf.f32 %v257_v34 }
 0x122   :  { %v476_v35 = vpop.eup %475 }
 0x123   :  { %v259_v37 = vadd.f32 1.0, %v476_v35 }
 0x125   :  { %v260_v38 = vmul.f32 %v259_v37, %v256_v36 }
 0x127   :  { %463 = vmatmul.mubr.f32.vlgmr.msra.gmra.mxu0 %v260_v38 }
 0x1e7   :  { %v350_v40 = vpop.f32.mrf.mxu0 }
 0x1e8   :  { %v351_v41 = vadd.f32 %v380_v39, %v350_v40 }
 0x1e9   :  { %v464_v42 = vpop.f32.mrf.mxu0 }
 0x1ea   :  { %v355_v43 = vmul.f32 0.70710677, %v351_v41  ;;  %v354_v45 = vmul.f32 0.5, %v351_v41 }
 0x1ec   :  { %477 = verf.f32 %v355_v43 }
 0x1f9   :  { %v478_v44 = vpop.eup %477 }
 0x1fa   :  { %v357_v46 = vadd.f32 1.0, %v478_v44 }
 0x1fc   :  { %v358_v47 = vmul.f32 %v357_v46, %v354_v45 }
 0x1fe   :  { %359 = vst [vmem:[#allocation11] sm:$0xff] %v358_v47 }
 0x1ff   :  { %590 = shalt.err (!%p587_p1)
}
 0x200   :  { %369 = dma.vmem_to_hbm [thread:$0]  %s367_s27, 128, %s729_s7, [#allocation4]  }
 0x201   :  { %605 = dma.done.wait [#allocation4], 128  }
 0x202   :  { %606 = vsyncadd [#allocation4], 4294967168 }
 0x203   :  { %373 = vsyncpa [#allocation3], 1 }
 0x204   :  { %374 = vsyncpa [#allocation6], 1 }
 0x205   :  { %375 = vsyncpa [#allocation9], 1 }
 0x206   :  { %376 = vsyncpa [#allocation4], 1 }

</bundles_post_ra>
